<compile_context>
chip_gen: v7x
topology: tpu7x:2x2x1
jax: 0.10.0
libtpu: 0.0.40
codegen_flags: <defaults>
</compile_context>

<pallas_src>
import functools

import jax
import jax.numpy as jnp
from jax.experimental import pallas as pl
from jax.experimental.pallas import tpu as pltpu

_LANE = 128
_SUBLANE = 8


def _round_up(x, m):
    return ((x + m - 1) // m) * m


# --------------------------------------------------------------------------- #
# Kernel
# --------------------------------------------------------------------------- #
def _actor_kernel(x_ref, w1_ref, b1_ref, w2_ref, b2_ref, w3_ref, b3_ref, out_ref):
    wdt = w1_ref.dtype  # matmul input dtype (bf16 by default)
    x = x_ref[...]

    # fc1 + ReLU  (MXU matmul, f32 accumulate; bias/ReLU on VPU in f32)
    h1 = jnp.dot(x.astype(wdt), w1_ref[...], preferred_element_type=jnp.float32)
    h1 = jnp.maximum(h1 + b1_ref[...], 0.0)

    # fc2 + ReLU
    h2 = jnp.dot(h1.astype(wdt), w2_ref[...], preferred_element_type=jnp.float32)
    h2 = jnp.maximum(h2 + b2_ref[...], 0.0)

    # action_head (no activation), lane-dense padded output
    a = jnp.dot(h2.astype(wdt), w3_ref[...], preferred_element_type=jnp.float32)
    out_ref[...] = a + b3_ref[...]


# --------------------------------------------------------------------------- #
# One-time parameter preprocessing (outside the hot path)
# --------------------------------------------------------------------------- #
def preprocess_params(params, weight_dtype=jnp.bfloat16):
    """Transpose to (in, out), cast weights, pad head to lane-dense width.

    Done once at init time so the per-step forward launches a single pallas_call.
    On v7x, fp8 (not int8) would be the quantized alternative for `weight_dtype`.
    """
    A = params["head_w"].shape[0]
    A_pad = _round_up(A, _LANE)

    w1 = params["fc1_w"].T.astype(weight_dtype)                     # (S, H)
    w2 = params["fc2_w"].T.astype(weight_dtype)                     # (H, H)
    w3 = params["head_w"].T.astype(weight_dtype)                    # (H, A)
    w3 = jnp.pad(w3, ((0, 0), (0, A_pad - A)))                      # (H, A_pad)

    b1 = params["fc1_b"][None, :].astype(jnp.float32)               # (1, H)
    b2 = params["fc2_b"][None, :].astype(jnp.float32)               # (1, H)
    b3 = jnp.pad(params["head_b"].astype(jnp.float32), (0, A_pad - A))[None, :]

    return dict(w1=w1, b1=b1, w2=w2, b2=b2, w3=w3, b3=b3)


# --------------------------------------------------------------------------- #
# Forward wrapper
# --------------------------------------------------------------------------- #
def deterministic_actor_forward(state, prep, *, action_dim, tile_b=512):
    """state: (B, state_dim) f32; prep: output of preprocess_params."""
    B, S = state.shape
    H = prep["w1"].shape[1]
    A_pad = prep["w3"].shape[1]

    # Batch tile: multiple of 8 sublanes, capped so activations stay small in VMEM.
    tile_b = min(tile_b, _round_up(B, _SUBLANE))
    B_pad = _round_up(B, tile_b)
    if B_pad != B:
        state = jnp.pad(state, ((0, B_pad - B), (0, 0)))

    grid = (B_pad // tile_b,)

    # VMEM budget: resident weights + double-buffered in/out tiles + activations.
    w_item = jnp.dtype(prep["w1"].dtype).itemsize
    weight_bytes = (S * H + H * H + H * A_pad) * w_item + (2 * H + A_pad) * 4
    stream_bytes = 2 * tile_b * (S + A_pad) * 4          # double-buffered I/O tiles
    act_bytes = 2 * tile_b * H * 4                       # h1, h2 intermediates
    vmem_limit = int(min(max(2 * (weight_bytes + stream_bytes + act_bytes),
                             16 * 2**20), 48 * 2**20))

    def pinned(shape):
        return pl.BlockSpec(shape, lambda i: (0, 0))     # VMEM-resident across grid

    out = pl.pallas_call(
        _actor_kernel,
        out_shape=jax.ShapeDtypeStruct((B_pad, A_pad), jnp.float32),
        grid=grid,
        in_specs=[
            pl.BlockSpec((tile_b, S), lambda i: (i, 0)),  # streamed state tiles
            pinned((S, H)), pinned((1, H)),               # fc1
            pinned((H, H)), pinned((1, H)),               # fc2
            pinned((H, A_pad)), pinned((1, A_pad)),       # head (lane-padded)
        ],
        out_specs=pl.BlockSpec((tile_b, A_pad), lambda i: (i, 0)),
        compiler_params=pltpu.CompilerParams(
            dimension_semantics=("parallel",),
            vmem_limit_bytes=vmem_limit,
        ),
    )(state, prep["w1"], prep["b1"], prep["w2"], prep["b2"], prep["w3"], prep["b3"])

    return out[:B, :action_dim]


# --------------------------------------------------------------------------- #
# Init + references
# --------------------------------------------------------------------------- #
def init_params(key, state_dim, action_dim, hidden_dim):
    """Deterministic synthetic init (PyTorch Linear shape conventions, f32)."""
    ks = jax.random.split(key, 6)

    def lin(kw, kb, out_d, in_d):
        bound = 1.0 / jnp.sqrt(in_d)
        w = jax.random.uniform(kw, (out_d, in_d), jnp.float32, -bound, bound)
        b = jax.random.uniform(kb, (out_d,), jnp.float32, -bound, bound)
        return w, b

    fc1_w, fc1_b = lin(ks[0], ks[1], hidden_dim, state_dim)
    fc2_w, fc2_b = lin(ks[2], ks[3], hidden_dim, hidden_dim)
    head_w, head_b = lin(ks[4], ks[5], action_dim, hidden_dim)
    return dict(fc1_w=fc1_w, fc1_b=fc1_b, fc2_w=fc2_w, fc2_b=fc2_b,
                head_w=head_w, head_b=head_b)


def _reference_forward_f32(state, p):
    x = jnp.maximum(state @ p["fc1_w"].T + p["fc1_b"], 0.0)
    x = jnp.maximum(x @ p["fc2_w"].T + p["fc2_b"], 0.0)
    return x @ p["head_w"].T + p["head_b"]


def _reference_forward_prep(state, prep, action_dim):
    """Same mixed-precision recipe as the kernel (bf16 matmul in, f32 accumulate)."""
    wdt = prep["w1"].dtype
    h1 = jnp.maximum(
        jnp.dot(state.astype(wdt), prep["w1"], preferred_element_type=jnp.float32)
        + prep["b1"], 0.0)
    h2 = jnp.maximum(
        jnp.dot(h1.astype(wdt), prep["w2"], preferred_element_type=jnp.float32)
        + prep["b2"], 0.0)
    a = jnp.dot(h2.astype(wdt), prep["w3"], preferred_element_type=jnp.float32) \
        + prep["b3"]
    return a[:, :action_dim]


if __name__ == "__main__":
    batch, state_dim, action_dim, hidden_dim = 8, 16, 4, 128

    key = jax.random.PRNGKey(0)
    k_state, k_params = jax.random.split(key)
    state = jax.random.normal(k_state, (batch, state_dim), jnp.float32)
    params = init_params(k_params, state_dim, action_dim, hidden_dim)

    # One-time preprocessing (transpose / cast / pad) -- not in the per-step path.
    prep = preprocess_params(params, weight_dtype=jnp.bfloat16)

    fwd = jax.jit(functools.partial(deterministic_actor_forward,
                                    action_dim=action_dim, tile_b=512))
    actions = jax.block_until_ready(fwd(state, prep))
    assert actions.shape == (batch, action_dim)

    # Exact check against a plain-JAX model with the identical precision recipe.
    ref_same = _reference_forward_prep(state, prep, action_dim)
    assert jnp.allclose(actions, ref_same, atol=1e-4, rtol=1e-4)

    # Sanity check against the full-f32 PyTorch-equivalent reference
    # (looser tolerance only because weights are stored in bf16 for the MXU path).
    ref_f32 = _reference_forward_f32(state, params)
    assert jnp.allclose(actions, ref_f32, atol=5e-2, rtol=5e-2)

    print("KERNEL_OK")
</pallas_src>

<mosaic_0001>
module attributes {stable_mosaic.version = 11 : i64} {
  func.func @_actor_kernel(%arg0: i32, %arg1: memref<8x16xf32, #tpu.memory_space<vmem>>, %arg2: memref<16x128xbf16, #tpu.memory_space<vmem>>, %arg3: memref<1x128xf32, #tpu.memory_space<vmem>>, %arg4: memref<128x128xbf16, #tpu.memory_space<vmem>>, %arg5: memref<1x128xf32, #tpu.memory_space<vmem>>, %arg6: memref<128x128xbf16, #tpu.memory_space<vmem>>, %arg7: memref<1x128xf32, #tpu.memory_space<vmem>>, %arg8: memref<8x128xf32, #tpu.memory_space<vmem>>) attributes {dimension_semantics = [#tpu.dimension_semantics<parallel>], iteration_bounds = array<i64: 1>, scalar_prefetch = 0 : i64, scratch_operands = 0 : i64, tpu.core_type = #tpu.core_type<tc>, window_params = [{transform_indices = @transform_0, window_bounds = array<i64: 8, 16>}, {pipeline_mode = #tpu.pipeline_mode<synchronous>, transform_indices = @transform_1, window_bounds = array<i64: 16, 128>}, {pipeline_mode = #tpu.pipeline_mode<synchronous>, transform_indices = @transform_2, window_bounds = array<i64: 1, 128>}, {pipeline_mode = #tpu.pipeline_mode<synchronous>, transform_indices = @transform_3, window_bounds = array<i64: 128, 128>}, {pipeline_mode = #tpu.pipeline_mode<synchronous>, transform_indices = @transform_4, window_bounds = array<i64: 1, 128>}, {pipeline_mode = #tpu.pipeline_mode<synchronous>, transform_indices = @transform_5, window_bounds = array<i64: 128, 128>}, {pipeline_mode = #tpu.pipeline_mode<synchronous>, transform_indices = @transform_6, window_bounds = array<i64: 1, 128>}, {transform_indices = @transform_7, window_bounds = array<i64: 8, 128>}]} {
    %c0 = arith.constant 0 : index
    %c0_0 = arith.constant 0 : index
    %0 = vector.load %arg1[%c0, %c0_0] : memref<8x16xf32, #tpu.memory_space<vmem>>, vector<8x16xf32>
    %1 = arith.truncf %0 : vector<8x16xf32> to vector<8x16xbf16>
    %c0_1 = arith.constant 0 : index
    %c0_2 = arith.constant 0 : index
    %2 = vector.load %arg2[%c0_1, %c0_2] : memref<16x128xbf16, #tpu.memory_space<vmem>>, vector<16x128xbf16>
    %cst = arith.constant dense<0.000000e+00> : vector<8x128xf32>
    %3 = tpu.matmul %1, %2, %cst {dimension_numbers = #tpu.dot_dimension_numbers<[1], [0], [0], [1], [0, 0, 1, 1], [], []>} : vector<8x16xbf16>, vector<16x128xbf16>, vector<8x128xf32> -> vector<8x128xf32>
    %c0_3 = arith.constant 0 : index
    %c0_4 = arith.constant 0 : index
    %4 = vector.load %arg3[%c0_3, %c0_4] : memref<1x128xf32, #tpu.memory_space<vmem>>, vector<1x128xf32>
    %5 = vector.broadcast %4 : vector<1x128xf32> to vector<8x128xf32>
    %6 = arith.addf %3, %5 : vector<8x128xf32>
    %cst_5 = arith.constant 0.000000e+00 : f32
    %7 = vector.broadcast %cst_5 : f32 to vector<8x128xf32>
    %8 = arith.maximumf %6, %7 : vector<8x128xf32>
    %9 = arith.truncf %8 : vector<8x128xf32> to vector<8x128xbf16>
    %c0_6 = arith.constant 0 : index
    %c0_7 = arith.constant 0 : index
    %10 = vector.load %arg4[%c0_6, %c0_7] : memref<128x128xbf16, #tpu.memory_space<vmem>>, vector<128x128xbf16>
    %cst_8 = arith.constant dense<0.000000e+00> : vector<8x128xf32>
    %11 = tpu.matmul %9, %10, %cst_8 {dimension_numbers = #tpu.dot_dimension_numbers<[1], [0], [0], [1], [0, 0, 1, 1], [], []>} : vector<8x128xbf16>, vector<128x128xbf16>, vector<8x128xf32> -> vector<8x128xf32>
    %c0_9 = arith.constant 0 : index
    %c0_10 = arith.constant 0 : index
    %12 = vector.load %arg5[%c0_9, %c0_10] : memref<1x128xf32, #tpu.memory_space<vmem>>, vector<1x128xf32>
    %13 = vector.broadcast %12 : vector<1x128xf32> to vector<8x128xf32>
    %14 = arith.addf %11, %13 : vector<8x128xf32>
    %cst_11 = arith.constant 0.000000e+00 : f32
    %15 = vector.broadcast %cst_11 : f32 to vector<8x128xf32>
    %16 = arith.maximumf %14, %15 : vector<8x128xf32>
    %17 = arith.truncf %16 : vector<8x128xf32> to vector<8x128xbf16>
    %c0_12 = arith.constant 0 : index
    %c0_13 = arith.constant 0 : index
    %18 = vector.load %arg6[%c0_12, %c0_13] : memref<128x128xbf16, #tpu.memory_space<vmem>>, vector<128x128xbf16>
    %cst_14 = arith.constant dense<0.000000e+00> : vector<8x128xf32>
    %19 = tpu.matmul %17, %18, %cst_14 {dimension_numbers = #tpu.dot_dimension_numbers<[1], [0], [0], [1], [0, 0, 1, 1], [], []>} : vector<8x128xbf16>, vector<128x128xbf16>, vector<8x128xf32> -> vector<8x128xf32>
    %c0_15 = arith.constant 0 : index
    %c0_16 = arith.constant 0 : index
    %20 = vector.load %arg7[%c0_15, %c0_16] : memref<1x128xf32, #tpu.memory_space<vmem>>, vector<1x128xf32>
    %21 = vector.broadcast %20 : vector<1x128xf32> to vector<8x128xf32>
    %22 = arith.addf %19, %21 : vector<8x128xf32>
    %c0_17 = arith.constant 0 : index
    %c0_18 = arith.constant 0 : index
    %23 = vector.load %arg8[%c0_17, %c0_18] : memref<8x128xf32, #tpu.memory_space<vmem>>, vector<8x128xf32>
    tpu.vector_store %arg8[%c0_17, %c0_18], %22 {strides = array<i32>} : memref<8x128xf32, #tpu.memory_space<vmem>>, vector<8x128xf32>,
    return
  }
  func.func @transform_0(%arg0: i32) -> (i32, i32) {
    %c0_i32 = arith.constant 0 : i32
    %c0_i32_0 = arith.constant 0 : i32
    return %arg0, %c0_i32 : i32, i32
  }
  func.func @transform_1(%arg0: i32) -> (i32, i32) {
    %c0_i32 = arith.constant 0 : i32
    %c0_i32_0 = arith.constant 0 : i32
    %c0_i32_1 = arith.constant 0 : i32
    return %c0_i32, %c0_i32_0 : i32, i32
  }
  func.func @transform_2(%arg0: i32) -> (i32, i32) {
    %c0_i32 = arith.constant 0 : i32
    %c0_i32_0 = arith.constant 0 : i32
    %c0_i32_1 = arith.constant 0 : i32
    return %c0_i32, %c0_i32_0 : i32, i32
  }
  func.func @transform_3(%arg0: i32) -> (i32, i32) {
    %c0_i32 = arith.constant 0 : i32
    %c0_i32_0 = arith.constant 0 : i32
    %c0_i32_1 = arith.constant 0 : i32
    return %c0_i32, %c0_i32_0 : i32, i32
  }
  func.func @transform_4(%arg0: i32) -> (i32, i32) {
    %c0_i32 = arith.constant 0 : i32
    %c0_i32_0 = arith.constant 0 : i32
    %c0_i32_1 = arith.constant 0 : i32
    return %c0_i32, %c0_i32_0 : i32, i32
  }
  func.func @transform_5(%arg0: i32) -> (i32, i32) {
    %c0_i32 = arith.constant 0 : i32
    %c0_i32_0 = arith.constant 0 : i32
    %c0_i32_1 = arith.constant 0 : i32
    return %c0_i32, %c0_i32_0 : i32, i32
  }
  func.func @transform_6(%arg0: i32) -> (i32, i32) {
    %c0_i32 = arith.constant 0 : i32
    %c0_i32_0 = arith.constant 0 : i32
    %c0_i32_1 = arith.constant 0 : i32
    return %c0_i32, %c0_i32_0 : i32, i32
  }
  func.func @transform_7(%arg0: i32) -> (i32, i32) {
    %c0_i32 = arith.constant 0 : i32
    %c0_i32_0 = arith.constant 0 : i32
    return %arg0, %c0_i32 : i32, i32
  }
}

</mosaic_0001>

<bundles_post_ra>
// kernel: deterministic_actor_forward.1
= control target key start
LH: loop header
LB: loop body
LE: loop exit
PB: predicated region body
PF: predicated region fallthrough
CT: control target
= control target key end

     0   :  { %12 = vsyncpa [#allocation3], 0  ;;  %s665_s0 = inlined_call_operand.hbm [shape: f32[8,16], index: 0, kind: input, shape index: {}]   ;;  %s666_s1 = inlined_call_operand.vmem [shape: bf16[16,128], index: 1, kind: input, shape index: {}]   ;;  %s667_s2 = inlined_call_operand.vmem [shape: f32[1,128], index: 2, kind: input, shape index: {}]   ;;  %s668_s3 = inlined_call_operand.hbm [shape: bf16[128,128], index: 3, kind: input, shape index: {}]   ;;  %s669_s4 = inlined_call_operand.vmem [shape: f32[1,128], index: 4, kind: input, shape index: {}]   ;;  %s670_s5 = inlined_call_operand.hbm [shape: bf16[128,128], index: 5, kind: input, shape index: {}]   ;;  %s671_s6 = inlined_call_operand.vmem [shape: f32[1,128], index: 6, kind: input, shape index: {}]   ;;  %s672_s7 = inlined_call_operand.vmem [shape: f32[8,128], index: 7, kind: output, shape index: {}]  }
   0x1   :  { %13 = vsyncpa [#allocation5], 0  ;;  %s541_s24 = smov [#allocation4]   ;;  %s471_s28 = scalar_lea.hbm %s668_s3, 1024 }
   0x2   :  { %s33_s25 = sshll.u32 %s541_s24, 4  ;;  %p472_p0 = scmp.ne.s32.totalorder %s668_s3, %s471_s28  ;;  %s34_s25 = int_to_ptr.vmem [resolvable:$true] %s33_s25 }
   0x3   :  { %p475_p1 = scmp.lt.u32.totalorder %s471_s28, %s668_s3 }
   0x5   :  { %p477_p2 = pnand %p475_p1, %p472_p0 }
   0x7   :  { %480 = shalt.err (!%p477_p2)
}
   0x8   :  { %s481_s10 = scalar_lea.vmem %s34_s25, 1024  ;;  %p486_p4 = scmp.lt.s32.totalorder %s34_s25, %s34_s25 }
   0x9   :  { %p482_p3 = scmp.ne.s32.totalorder %s34_s25, %s481_s10  ;;  %p487_p5 = scmp.lt.s32.totalorder %s481_s10, %s481_s10 }
   0xb   :  { %p488_p6 = por %p487_p5, %p486_p4 }
   0xd   :  { %p489_p7 = pnand %p488_p6, %p482_p3 }
   0xf   :  { %492 = shalt.err (!%p489_p7)
}
  0x10   :  { %s542_s11 = smov 64   ;;  %s543_s12 = smov 4  }
  0x11   :  { %39 = dma.hbm_to_vmem [thread:$0]  %s668_s3, 1024, %s34_s25, [#allocation5], %s542_s11, %s542_s11, %s543_s12  }
  0x12   :  { %s544_s15 = smov [#allocation2]   ;;  %s545_s17 = smov [#allocation6]  }
  0x13   :  { %s20_s16 = sshll.u32 %s544_s15, 4  ;;  %s47_s18 = sshll.u32 %s545_s17, 4  ;;  %s21_s16 = int_to_ptr.vmem [resolvable:$true] %s20_s16  ;;  %s48_s18 = int_to_ptr.vmem [resolvable:$true] %s47_s18 }
  0x14   :  { %s493_s21 = scalar_lea.hbm %s665_s0, 128 }
  0x15   :  { %p494_p8 = scmp.ne.s32.totalorder %s665_s0, %s493_s21  ;;  %p497_p9 = scmp.lt.u32.totalorder %s493_s21, %s665_s0 }
  0x17   :  { %p499_p10 = pnand %p497_p9, %p494_p8 }
  0x19   :  { %502 = shalt.err (!%p499_p10)
}
  0x1a   :  { %s503_s3 = scalar_lea.vmem %s21_s16, 128  ;;  %p508_p12 = scmp.lt.s32.totalorder %s21_s16, %s21_s16 }
  0x1b   :  { %p504_p11 = scmp.ne.s32.totalorder %s21_s16, %s503_s3  ;;  %p509_p13 = scmp.lt.s32.totalorder %s503_s3, %s503_s3 }
  0x1d   :  { %p510_p0 = por %p509_p13, %p508_p12 }
  0x1f   :  { %p511_p1 = pnand %p510_p0, %p504_p11 }
  0x21   :  { %514 = shalt.err (!%p511_p1)
}
  0x22   :  { %23 = dma.hbm_to_vmem [thread:$0]  %s665_s0, 128, %s21_s16, [#allocation3]  }
  0x23   :  { %s515_s30 = scalar_lea.hbm %s670_s5, 1024 }
  0x24   :  { %p516_p2 = scmp.ne.s32.totalorder %s670_s5, %s515_s30  ;;  %p519_p3 = scmp.lt.u32.totalorder %s515_s30, %s670_s5 }
  0x26   :  { %p521_p4 = pnand %p519_p3, %p516_p2 }
  0x28   :  { %524 = shalt.err (!%p521_p4)
}
  0x29   :  { %s525_s14 = scalar_lea.vmem %s48_s18, 1024  ;;  %p530_p6 = scmp.lt.s32.totalorder %s48_s18, %s48_s18 }
  0x2a   :  { %p526_p5 = scmp.ne.s32.totalorder %s48_s18, %s525_s14  ;;  %p531_p7 = scmp.lt.s32.totalorder %s525_s14, %s525_s14 }
  0x2c   :  { %p532_p8 = por %p531_p7, %p530_p6 }
  0x2e   :  { %p533_p9 = pnand %p532_p8, %p526_p5 }
  0x30   :  { %536 = shalt.err (!%p533_p9)
}
  0x31   :  { %53 = dma.hbm_to_vmem [thread:$0]  %s670_s5, 1024, %s48_s18, [#allocation5], %s542_s11, %s542_s11, %s543_s12  }
  0x32   :  { %537 = dma.done.wait [#allocation3], 128  }
  0x33   :  { %538 = vsyncadd [#allocation3], 4294967168 }
  0x34   :  { %539 = dma.done.wait [#allocation5], 2048  }
  0x35   :  { %540 = vsyncadd [#allocation5], 4294965248  ;;  %v546_v0 = vmov 0.0   ;;  %vm547_vm0 = vmmov 0   ;;  %v454_v1 = vld [vmem:[%s666_s1] sm:$0xff]   ;;  %vm83_vm1 = vcmask 130048  }
  0x36   :  { %401 = vmatprep.subr.bf16.mxu0 %v546_v0  ;;  %403 = vmatprep.mubr.msk.bf16.mxu0 %vm547_vm0, %v546_v0  ;;  %v66_v2 = vld [vmem:[#allocation2] sm:$0xff]  ;;  %v455_v4 = vld [vmem:[#allocation4] sm:$0xff]   ;;  %v456_v5 = vld [vmem:[#allocation4 + $0x8] sm:$0xff]  }
  0x37   :  { %407 = vmatprep.subr.bf16.mxu1 %v546_v0  ;;  %423 = vmatprep.mubr.msk.bf16.mxu1 %vm547_vm0, %v546_v0  ;;  %v67_v3 = vpack.c.bf16 %v66_v2, %v66_v2  ;;  %v457_v6 = vld [vmem:[#allocation4 + $0x10] sm:$0xff]   ;;  %v458_v7 = vld [vmem:[#allocation4 + $0x18] sm:$0xff]   ;;  %v459_v8 = vld [vmem:[#allocation4 + $0x20] sm:$0xff]  }
  0x38   :  { %402 = vmatpush3.bf16.msra.mxu0 %v454_v1  ;;  %408 = vmatpush3.bf16.msra.mxu1 %v455_v4  ;;  %v460_v9 = vld [vmem:[#allocation4 + $0x28] sm:$0xff]   ;;  %v461_v10 = vld [vmem:[#allocation4 + $0x30] sm:$0xff]   ;;  %v462_v11 = vld [vmem:[#allocation4 + $0x38] sm:$0xff]  }
  0x39   :  { %427 = vmatprep.subr.bf16.mxu0 %v546_v0  ;;  %409 = vmatprep.subr.bf16.mxu1 %v546_v0  ;;  %v463_v12 = vld [vmem:[#allocation6] sm:$0xff]   ;;  %v464_v13 = vld [vmem:[#allocation6 + $0x8] sm:$0xff]   ;;  %v465_v14 = vld [vmem:[#allocation6 + $0x10] sm:$0xff]  }
  0x3a   :  { %v466_v15 = vld [vmem:[#allocation6 + $0x18] sm:$0xff]   ;;  %v467_v16 = vld [vmem:[#allocation6 + $0x20] sm:$0xff]   ;;  %v468_v17 = vld [vmem:[#allocation6 + $0x28] sm:$0xff]  }
  0x3b   :  { %404 = vmatmul.mubr.msk.bf16.vlgmr.msra.gmra.mrb[0].mxu0 %vm83_vm1, %v67_v3  ;;  %v360_v18 = vld [vmem:[%s667_s2] ss:$0 sm:$0xff]  ;;  %v469_v26 = vld [vmem:[#allocation6 + $0x30] sm:$0xff]  }
  0x3c   :  { %443 = vmatprep.mubr.msk.bf16.mxu0 %vm547_vm0, %v546_v0  ;;  %410 = vmatpush3.bf16.msra.mxu1 %v456_v5  ;;  %v470_v27 = vld [vmem:[#allocation6 + $0x38] sm:$0xff]  }
  0x3d   :  { %411 = vmatprep.subr.bf16.mxu1 %v546_v0  ;;  %428 = vmatpush3.bf16.msra.mxu0 %v463_v12  ;;  %v363_v28 = vld [vmem:[%s669_s4] ss:$0 sm:$0xff] }
  0x3e   :  { %429 = vmatprep.subr.bf16.mxu0 %v546_v0  ;;  %v372_v36 = vld [vmem:[%s671_s6] ss:$0 sm:$0xff] }
  0x40   :  { %412 = vmatpush3.bf16.msra.mxu1 %v457_v6 }
  0x41   :  { %413 = vmatprep.subr.bf16.mxu1 %v546_v0  ;;  %430 = vmatpush3.bf16.msra.mxu0 %v464_v13 }
  0x42   :  { %431 = vmatprep.subr.bf16.mxu0 %v546_v0 }
  0x44   :  { %414 = vmatpush3.bf16.msra.mxu1 %v458_v7 }
  0x45   :  { %415 = vmatprep.subr.bf16.mxu1 %v546_v0  ;;  %432 = vmatpush3.bf16.msra.mxu0 %v465_v14 }
  0x46   :  { %433 = vmatprep.subr.bf16.mxu0 %v546_v0 }
  0x48   :  { %416 = vmatpush3.bf16.msra.mxu1 %v459_v8 }
  0x49   :  { %417 = vmatprep.subr.bf16.mxu1 %v546_v0  ;;  %434 = vmatpush3.bf16.msra.mxu0 %v466_v15 }
  0x4a   :  { %435 = vmatprep.subr.bf16.mxu0 %v546_v0 }
  0x4c   :  { %418 = vmatpush3.bf16.msra.mxu1 %v460_v9 }
  0x4d   :  { %419 = vmatprep.subr.bf16.mxu1 %v546_v0  ;;  %436 = vmatpush3.bf16.msra.mxu0 %v467_v16 }
  0x4e   :  { %437 = vmatprep.subr.bf16.mxu0 %v546_v0 }
  0x50   :  { %420 = vmatpush3.bf16.msra.mxu1 %v461_v10 }
  0x51   :  { %421 = vmatprep.subr.bf16.mxu1 %v546_v0  ;;  %438 = vmatpush3.bf16.msra.mxu0 %v468_v17 }
  0x52   :  { %439 = vmatprep.subr.bf16.mxu0 %v546_v0 }
  0x54   :  { %422 = vmatpush3.bf16.msra.mxu1 %v462_v11 }
  0x55   :  { %440 = vmatpush3.bf16.msra.mxu0 %v469_v26 }
  0x56   :  { %441 = vmatprep.subr.bf16.mxu0 %v546_v0 }
  0x59   :  { %442 = vmatpush3.bf16.msra.mxu0 %v470_v27 }
 0x10e   :  { %v121_v19 = vpop.f32.mrb[0].mxu0 }
 0x10f   :  { %v122_v20 = vadd.f32 %v360_v18, %v121_v19  ;;  %v405_v21 = vpop.f32.mrb[1].mxu0 }
 0x110   :  { %v124_v22 = vpop.f32.mrb[2].mxu0 }
 0x111   :  { %v127_v23 = vmax.f32 %v122_v20, 0.0  ;;  %v406_v24 = vpop.f32.mrb[3].mxu0 }
 0x113   :  { %v128_v25 = vpack.c.bf16 %v127_v23, %v127_v23 }
 0x115   :  { %424 = vmatmul.mubr.bf16.vlgmr.msra.gmra.mrb[0].mxu1 %v128_v25 }
 0x1e8   :  { %v234_v29 = vpop.f32.mrb[0].mxu1 }
 0x1e9   :  { %v235_v30 = vadd.f32 %v363_v28, %v234_v29  ;;  %v425_v31 = vpop.f32.mrb[1].mxu1 }
 0x1ea   :  { %v237_v32 = vpop.f32.mrb[2].mxu1 }
 0x1eb   :  { %v240_v33 = vmax.f32 %v235_v30, 0.0  ;;  %v426_v34 = vpop.f32.mrb[3].mxu1 }
 0x1ed   :  { %v241_v35 = vpack.c.bf16 %v240_v33, %v240_v33 }
 0x1ef   :  { %444 = vmatmul.mubr.bf16.vlgmr.msra.gmra.mrb[4].mxu0 %v241_v35 }
 0x2c2   :  { %v347_v37 = vpop.f32.mrb[4].mxu0 }
 0x2c3   :  { %v348_v38 = vadd.f32 %v372_v36, %v347_v37  ;;  %v445_v39 = vpop.f32.mrb[5].mxu0 }
 0x2c4   :  { %v350_v40 = vpop.f32.mrb[6].mxu0 }
 0x2c5   :  { %353 = vst [vmem:[%s672_s7] sm:$0xff] %v348_v38  ;;  %v446_v41 = vpop.f32.mrb[7].mxu0 }
 0x2c6   :  { %358 = vsyncpa [#allocation3], 1 }
 0x2c7   :  { %359 = vsyncpa [#allocation5], 1 }

</bundles_post_ra>
